<compile_context>
chip_gen: v6e
topology: v6e:2x2x1
jax: 0.10.0
libtpu: 0.0.40
codegen_flags: <defaults>
</compile_context>

<pallas_src>
import math
from functools import partial

import jax
import jax.numpy as jnp
from jax import lax
from jax.experimental import pallas as pl
from jax.experimental.pallas import tpu as pltpu


def _time_embedding_kernel(tt_ref, w_sin_ref, w_cos_ref, b_ref, o_ref,
                           *, half_dim, neg_scale):
    tt = tt_ref[...]                                            # (tile, 1) f32

    # Sinusoidal frequencies generated in-kernel: iota (VPU) + exp (EUP slot).
    idx = lax.broadcasted_iota(jnp.int32, (1, half_dim), 1).astype(jnp.float32)
    freqs = jnp.exp(idx * neg_scale)                            # (1, H)

    arg = tt * freqs                                            # (tile, H) broadcast

    s = jnp.sin(arg)
    c = jnp.cos(arg)
    s = s * jax.nn.sigmoid(s)                                   # SiLU
    c = c * jax.nn.sigmoid(c)

    # Split matmul (sin half + cos half) -> no lane-axis concatenate/relayout.
    y = jnp.dot(s, w_sin_ref[...], preferred_element_type=jnp.float32)
    y = y + jnp.dot(c, w_cos_ref[...], preferred_element_type=jnp.float32)
    o_ref[...] = y + b_ref[...]


def make_time_embedding(weight, bias, emb_dim, *, max_tile=512):
    """One-time parameter prep. Returns apply(tt: (N,1) f32) -> (N, out_dim) f32.

    weight: (out_dim, emb_dim)  (PyTorch Linear layout), bias: (out_dim,)
    """
    out_dim = weight.shape[0]
    half_dim = emb_dim // 2
    assert half_dim >= 2, "emb_dim must be >= 4 (log(1000)/(half_dim-1) would divide by zero)"
    neg_scale = -math.log(1000.0) / (half_dim - 1)

    w = jnp.asarray(weight, dtype=jnp.float32)
    # Pre-transpose & split ONCE (not per call).  Odd emb_dim: the padded zero
    # column contributes silu(0)=0, so its weight column is simply dropped.
    w_sin = jnp.asarray(w[:, :half_dim].T)                      # (H, out_dim)
    w_cos = jnp.asarray(w[:, half_dim:2 * half_dim].T)          # (H, out_dim)
    b2 = jnp.asarray(bias, dtype=jnp.float32)[None, :]          # (1, out_dim)

    kernel = partial(_time_embedding_kernel, half_dim=half_dim, neg_scale=neg_scale)

    def apply(tt):
        assert tt.ndim == 2 and tt.shape[1] == 1
        tt = tt.astype(jnp.float32)
        N = tt.shape[0]

        # Tile over N: tt/out DMAs pipeline behind compute; weight/bias stay
        # VMEM-resident across steps; "parallel" lets v7x shard across 2 TCs.
        if N <= max_tile:
            tile = N                                  # block == full dim -> always legal
        else:
            tile = max_tile                           # multiple of 8 (sublane aligned)
            rem = N % tile
            if rem:
                tt = jnp.pad(tt, ((0, tile - rem), (0, 0)))
        n_pad = tt.shape[0]
        grid = (n_pad // tile,)

        # NOTE: out_dim=32 -> masked (partial-lane) stores; for large N the
        # lane-dense-output trick or fusing with the downstream consumer would
        # help further, but at these shapes it is not the bottleneck.
        out = pl.pallas_call(
            kernel,
            out_shape=jax.ShapeDtypeStruct((n_pad, out_dim), jnp.float32),
            grid_spec=pltpu.PrefetchScalarGridSpec(
                num_scalar_prefetch=0,
                grid=grid,
                in_specs=[
                    pl.BlockSpec((tile, 1), lambda i: (i, 0)),            # tt
                    pl.BlockSpec((half_dim, out_dim), lambda i: (0, 0)),  # w_sin (resident)
                    pl.BlockSpec((half_dim, out_dim), lambda i: (0, 0)),  # w_cos (resident)
                    pl.BlockSpec((1, out_dim), lambda i: (0, 0)),         # bias  (resident)
                ],
                out_specs=pl.BlockSpec((tile, out_dim), lambda i: (i, 0)),
            ),
            compiler_params=pltpu.CompilerParams(
                dimension_semantics=("parallel",)),
        )(tt, w_sin, w_cos, b2)
        return out[:N]

    return jax.jit(apply)


def reference_time_embedding(tt, weight, bias, emb_dim):
    """Pure-JAX reference mirroring the PyTorch forward."""
    half_dim = emb_dim // 2
    scale = math.log(1000.0) / (half_dim - 1)
    freqs = jnp.exp(jnp.arange(half_dim, dtype=jnp.float32) * -scale)
    emb = tt.astype(jnp.float32) * freqs[None, :]
    emb = jnp.concatenate([jnp.sin(emb), jnp.cos(emb)], axis=-1)
    if emb_dim % 2 == 1:
        emb = jnp.pad(emb, ((0, 0), (0, 1)))
    act = emb * jax.nn.sigmoid(emb)
    return act @ weight.T.astype(jnp.float32) + bias.astype(jnp.float32)[None, :]


if __name__ == "__main__":
    key = jax.random.PRNGKey(0)
    k_tt, k_w, k_b = jax.random.split(key, 3)

    N = 8
    emb_dim = 32
    out_dim = 32

    tt = jax.random.uniform(k_tt, (N, 1), dtype=jnp.float32) * 10.0

    # Deterministic PyTorch-style Linear init: uniform(-1/sqrt(in), 1/sqrt(in)).
    bound = 1.0 / math.sqrt(emb_dim)
    weight = jax.random.uniform(k_w, (out_dim, emb_dim), minval=-bound, maxval=bound,
                                dtype=jnp.float32)
    bias = jax.random.uniform(k_b, (out_dim,), minval=-bound, maxval=bound,
                              dtype=jnp.float32)

    time_embedding = make_time_embedding(weight, bias, emb_dim)

    out = time_embedding(tt)
    out = jax.block_until_ready(out)

    ref = reference_time_embedding(tt, weight, bias, emb_dim)
    assert out.shape == (N, out_dim)
    assert jnp.allclose(out, ref, atol=1e-5, rtol=1e-5), float(jnp.max(jnp.abs(out - ref)))

    print("KERNEL_OK")
</pallas_src>

<mosaic_0001>
module attributes {stable_mosaic.version = 11 : i64} {
  func.func @_time_embedding_kernel(%arg0: i32, %arg1: memref<8x1xf32, #tpu.memory_space<vmem>>, %arg2: memref<16x32xf32, #tpu.memory_space<vmem>>, %arg3: memref<16x32xf32, #tpu.memory_space<vmem>>, %arg4: memref<1x32xf32, #tpu.memory_space<vmem>>, %arg5: memref<8x32xf32, #tpu.memory_space<vmem>>) attributes {dimension_semantics = [#tpu.dimension_semantics<parallel>], iteration_bounds = array<i64: 1>, scalar_prefetch = 0 : i64, scratch_operands = 0 : i64, tpu.core_type = #tpu.core_type<tc>, window_params = [{transform_indices = @transform_0, window_bounds = array<i64: 8, 1>}, {pipeline_mode = #tpu.pipeline_mode<synchronous>, transform_indices = @transform_1, window_bounds = array<i64: 16, 32>}, {pipeline_mode = #tpu.pipeline_mode<synchronous>, transform_indices = @transform_2, window_bounds = array<i64: 16, 32>}, {pipeline_mode = #tpu.pipeline_mode<synchronous>, transform_indices = @transform_3, window_bounds = array<i64: 1, 32>}, {transform_indices = @transform_4, window_bounds = array<i64: 8, 32>}]} {
    %c0 = arith.constant 0 : index
    %c0_0 = arith.constant 0 : index
    %0 = vector.load %arg1[%c0, %c0_0] : memref<8x1xf32, #tpu.memory_space<vmem>>, vector<8x1xf32>
    %1 = tpu.iota {dimensions = array<i32: 1>} : vector<1x16xi32>
    %2 = arith.sitofp %1 : vector<1x16xi32> to vector<1x16xf32>
    %cst = arith.constant -0.460517019 : f32
    %3 = vector.broadcast %cst : f32 to vector<1x16xf32>
    %4 = arith.mulf %2, %3 : vector<1x16xf32>
    %5 = math.exp %4 : vector<1x16xf32>
    %6 = vector.broadcast %0 : vector<8x1xf32> to vector<8x16xf32>
    %7 = vector.broadcast %5 : vector<1x16xf32> to vector<8x16xf32>
    %8 = arith.mulf %6, %7 : vector<8x16xf32>
    %9 = math.sin %8 : vector<8x16xf32>
    %10 = math.cos %8 : vector<8x16xf32>
    %11 = arith.negf %9 : vector<8x16xf32>
    %12 = math.exp %11 : vector<8x16xf32>
    %cst_1 = arith.constant 1.000000e+00 : f32
    %13 = vector.broadcast %cst_1 : f32 to vector<8x16xf32>
    %14 = arith.addf %13, %12 : vector<8x16xf32>
    %15 = arith.divf %13, %14 : vector<8x16xf32>
    %16 = arith.mulf %9, %15 : vector<8x16xf32>
    %17 = arith.negf %10 : vector<8x16xf32>
    %18 = math.exp %17 : vector<8x16xf32>
    %cst_2 = arith.constant 1.000000e+00 : f32
    %19 = vector.broadcast %cst_2 : f32 to vector<8x16xf32>
    %20 = arith.addf %19, %18 : vector<8x16xf32>
    %21 = arith.divf %19, %20 : vector<8x16xf32>
    %22 = arith.mulf %10, %21 : vector<8x16xf32>
    %c0_3 = arith.constant 0 : index
    %c0_4 = arith.constant 0 : index
    %23 = vector.load %arg2[%c0_3, %c0_4] : memref<16x32xf32, #tpu.memory_space<vmem>>, vector<16x32xf32>
    %cst_5 = arith.constant dense<0.000000e+00> : vector<8x32xf32>
    %24 = tpu.matmul %16, %23, %cst_5 {dimension_numbers = #tpu.dot_dimension_numbers<[1], [0], [0], [1], [0, 0, 1, 1], [], []>} : vector<8x16xf32>, vector<16x32xf32>, vector<8x32xf32> -> vector<8x32xf32>
    %c0_6 = arith.constant 0 : index
    %c0_7 = arith.constant 0 : index
    %25 = vector.load %arg3[%c0_6, %c0_7] : memref<16x32xf32, #tpu.memory_space<vmem>>, vector<16x32xf32>
    %cst_8 = arith.constant dense<0.000000e+00> : vector<8x32xf32>
    %26 = tpu.matmul %22, %25, %cst_8 {dimension_numbers = #tpu.dot_dimension_numbers<[1], [0], [0], [1], [0, 0, 1, 1], [], []>} : vector<8x16xf32>, vector<16x32xf32>, vector<8x32xf32> -> vector<8x32xf32>
    %27 = arith.addf %24, %26 : vector<8x32xf32>
    %c0_9 = arith.constant 0 : index
    %c0_10 = arith.constant 0 : index
    %28 = vector.load %arg4[%c0_9, %c0_10] : memref<1x32xf32, #tpu.memory_space<vmem>>, vector<1x32xf32>
    %29 = vector.broadcast %28 : vector<1x32xf32> to vector<8x32xf32>
    %30 = arith.addf %27, %29 : vector<8x32xf32>
    %c0_11 = arith.constant 0 : index
    %c0_12 = arith.constant 0 : index
    %31 = vector.load %arg5[%c0_11, %c0_12] : memref<8x32xf32, #tpu.memory_space<vmem>>, vector<8x32xf32>
    tpu.vector_store %arg5[%c0_11, %c0_12], %30 {strides = array<i32>} : memref<8x32xf32, #tpu.memory_space<vmem>>, vector<8x32xf32>,
    return
  }
  func.func @transform_0(%arg0: i32) -> (i32, i32) {
    %c0_i32 = arith.constant 0 : i32
    %c0_i32_0 = arith.constant 0 : i32
    return %arg0, %c0_i32 : i32, i32
  }
  func.func @transform_1(%arg0: i32) -> (i32, i32) {
    %c0_i32 = arith.constant 0 : i32
    %c0_i32_0 = arith.constant 0 : i32
    %c0_i32_1 = arith.constant 0 : i32
    return %c0_i32, %c0_i32_0 : i32, i32
  }
  func.func @transform_2(%arg0: i32) -> (i32, i32) {
    %c0_i32 = arith.constant 0 : i32
    %c0_i32_0 = arith.constant 0 : i32
    %c0_i32_1 = arith.constant 0 : i32
    return %c0_i32, %c0_i32_0 : i32, i32
  }
  func.func @transform_3(%arg0: i32) -> (i32, i32) {
    %c0_i32 = arith.constant 0 : i32
    %c0_i32_0 = arith.constant 0 : i32
    %c0_i32_1 = arith.constant 0 : i32
    return %c0_i32, %c0_i32_0 : i32, i32
  }
  func.func @transform_4(%arg0: i32) -> (i32, i32) {
    %c0_i32 = arith.constant 0 : i32
    %c0_i32_0 = arith.constant 0 : i32
    return %arg0, %c0_i32 : i32, i32
  }
}

</mosaic_0001>

<bundles_post_ra>
// kernel: apply.1
= control target key start
LH: loop header
LB: loop body
LE: loop exit
PB: predicated region body
PF: predicated region fallthrough
CT: control target
= control target key end

     0   :  { %9 = vsyncpa [#allocation3], 0  ;;  %s664_s0 = inlined_call_operand.vmem [shape: f32[8,1], index: 0, kind: input, shape index: {}]   ;;  %s665_s1 = inlined_call_operand.hbm [shape: f32[16,32], index: 1, kind: input, shape index: {}]   ;;  %s666_s2 = inlined_call_operand.hbm [shape: f32[16,32], index: 2, kind: input, shape index: {}]   ;;  %s667_s3 = inlined_call_operand.vmem [shape: f32[1,32], index: 3, kind: input, shape index: {}]   ;;  %s668_s4 = inlined_call_operand.hbm [shape: f32[8,32], index: 4, kind: output, shape index: {}]  }
   0x1   :  { %10 = vsyncpa [#allocation6], 0 }
   0x2   :  { %11 = vsyncpa [#allocation4], 0  ;;  %s589_s15 = smov [#allocation2]  }
   0x3   :  { %s19_s16 = sshll.u32 %s589_s15, 4  ;;  %s20_s16 = int_to_ptr.vmem [resolvable:$true] %s19_s16 }
   0x4   :  { %s531_s17 = scalar_lea.vmem %s20_s16, 256  ;;  %p536_p1 = scmp.lt.s32.totalorder %s20_s16, %s20_s16 }
   0x5   :  { %p532_p0 = scmp.ne.s32.totalorder %s20_s16, %s531_s17  ;;  %p537_p2 = scmp.lt.s32.totalorder %s531_s17, %s531_s17 }
   0x7   :  { %p538_p3 = por %p537_p2, %p536_p1 }
   0x9   :  { %p539_p4 = pnand %p538_p3, %p532_p0 }
   0xb   :  { %542 = shalt.err (!%p539_p4)
}
   0xc   :  { %s590_s18 = smov 128   ;;  %s591_s19 = smov 8  }
   0xd   :  { %25 = dma.hbm_to_vmem [thread:$0]  %s665_s1, 256, %s20_s16, [#allocation3], %s590_s18, %s590_s18, %s591_s19  }
   0xe   :  { %s592_s22 = smov [#allocation5]  }
   0xf   :  { %s31_s23 = sshll.u32 %s592_s22, 4  ;;  %s32_s23 = int_to_ptr.vmem [resolvable:$true] %s31_s23 }
  0x10   :  { %s551_s24 = scalar_lea.vmem %s32_s23, 256  ;;  %p556_p6 = scmp.lt.s32.totalorder %s32_s23, %s32_s23 }
  0x11   :  { %p552_p5 = scmp.ne.s32.totalorder %s32_s23, %s551_s24  ;;  %p557_p7 = scmp.lt.s32.totalorder %s551_s24, %s551_s24 }
  0x13   :  { %p558_p8 = por %p557_p7, %p556_p6 }
  0x15   :  { %p559_p9 = pnand %p558_p8, %p552_p5 }
  0x17   :  { %562 = shalt.err (!%p559_p9)
}
  0x18   :  { %37 = dma.hbm_to_vmem [thread:$0]  %s666_s2, 256, %s32_s23, [#allocation6], %s590_s18, %s590_s18, %s591_s19  }
  0x19   :  { %583 = dma.done.wait [#allocation3], 256  }
  0x1a   :  { %584 = vsyncadd [#allocation3], 4294967040 }
  0x1b   :  { %585 = dma.done.wait [#allocation6], 256  }
  0x1c   :  { %586 = vsyncadd [#allocation6], 4294967040  ;;  %v593_v0 = vmov 0   ;;  %v46_v1 = vld [vmem:[%s664_s0] sm:$0xff]  ;;  %v283_v2 = vld [vmem:[#allocation5 + $0x8] sm:$0xff]  ;;  %v594_v4 = vmov 0.0   ;;  %v47_v7 = vlaneseq }
  0x1d   :  { %508 = vset.pattern.permute.xlu0 %v593_v0  ;;  %v281_v3 = vld [vmem:[#allocation2 + $0x8] sm:$0xff]  ;;  %476 = vmatprep.subr.mxu0 %v594_v4  ;;  %v282_v5 = vld [vmem:[#allocation5] sm:$0xff]  ;;  %v280_v6 = vld [vmem:[#allocation2] sm:$0xff]  ;;  %vm595_vm0 = vmmov 0   ;;  %v596_v25 = vmov 683565275  }
  0x1e   :  { %55 = vperm.xlu0 %508, %v46_v1   ;;  %483 = vmatprep.subr.mxu1 %v594_v4  ;;  %v48_v8 = vand.u32 127, %v47_v7  ;;  %v597_v27 = vmov 2475754826   ;;  %v598_v30 = vmov 2131351028   ;;  %s602_s28 = smov [#allocation7]  }
  0x1f   :  { %477 = vmatpush3.msra.mxu0 %v283_v2  ;;  %484 = vmatpush3.msra.mxu1 %v281_v3  ;;  %v599_v33 = vmov 2102212464   ;;  %v600_v36 = vmov 920167782   ;;  %v601_v39 = vmov 1326507024  }
  0x20   :  { %478 = vmatprep.subr.mxu0 %v594_v4  ;;  %485 = vmatprep.subr.mxu1 %v594_v4  ;;  %v49_v9 = vcvt.s32.f32 %v48_v8  ;;  %s447_s29 = sshll.u32 %s602_s28, 4  ;;  %s448_s29 = int_to_ptr.vmem [resolvable:$true] %s447_s29 }
  0x21   :  { %479 = vmatpush3.msra.mxu0 %v282_v5  ;;  %480 = vmatprep.mubr.msk.f32.mxu0 %vm595_vm0, %v594_v4  ;;  %s563_s30 = scalar_lea.vmem %s448_s29, 128  ;;  %p568_p11 = scmp.lt.s32.totalorder %s448_s29, %s448_s29 }
  0x22   :  { %486 = vmatpush3.msra.mxu1 %v280_v6  ;;  %487 = vmatprep.mubr.msk.f32.mxu1 %vm595_vm0, %v594_v4  ;;  %v50_v10 = vmul.f32 -0.46051702, %v49_v9  ;;  %p564_p10 = scmp.ne.s32.totalorder %s448_s29, %s563_s30  ;;  %p569_p12 = scmp.lt.s32.totalorder %s563_s30, %s563_s30 }
  0x24   :  { %v51_v11 = vmul.f32 1.442695, %v50_v10  ;;  %p570_p13 = por %p569_p12, %p568_p11 }
  0x26   :  { %509 = vpow2.f32 %v51_v11  ;;  %p571_p0 = pnand %p570_p13, %p564_p10 }
  0x33   :  { %v510_v12 = vpop.eup %509 }
  0x99   :  { %v56_v13 = vpop.permute.xlu0 %55 }
  0x9a   :  { %v637_v14 = vmul.f32 %v510_v12, %v56_v13 }
  0x9c   :  { %v62_v15 = vand.u32 2139095040, %v637_v14  ;;  %v59_v19 = vand.u32 2147483647, %v637_v14  ;;  %vm61_vm8 = vcmp.lt.s32.totalorder %v637_v14, 0  ;;  %vm151_vm0 = vweird.f32 %v637_v14 }
  0x9e   :  { %v63_v16 = vshrl.u32 %v62_v15, 23  ;;  %v66_v22 = vand.u32 8388607, %v59_v19  ;;  %vm60_vm9 = vcmp.le.f32.partialorder %v59_v19, 0.7853982 }
  0xa0   :  { %v457_v17 = vadd.s32 4294967169, %v63_v16  ;;  %v67_v41 = vor.u32 8388608, %v66_v22 }
  0xa2   :  { %v69_v18 = vadd.s32 1, %v457_v17  ;;  %v107_v55 = vshll.u32 %v67_v41, 8 }
  0xa4   :  { %vm70_vm1 = vcmp.gt.s32.totalorder %v69_v18, 0 }
  0xa5   :  { %v71_v20 = vsel %vm70_vm1, %v69_v18, 0  ;;  %vm284_vm1 = vcmask 130048  }
  0xa6   :  { %v73_v21 = vand.u32 31, %v71_v20  ;;  %v72_v24 = vshrl.u32 %v71_v20, 5 }
  0xa8   :  { %v74_v23 = vsub.s32 32, %v73_v21  ;;  %v76_v26 = vshll.u32 %v596_v25, %v73_v21  ;;  %v79_v28 = vshll.u32 %v597_v27, %v73_v21  ;;  %v82_v32 = vshll.u32 %v598_v30, %v73_v21 }
  0xa9   :  { %v85_v35 = vshll.u32 %v599_v33, %v73_v21  ;;  %v88_v38 = vshll.u32 %v600_v36, %v73_v21  ;;  %vm91_vm2 = vcmp.lt.s32.totalorder %v72_v24, 1  ;;  %vm94_vm3 = vcmp.lt.s32.totalorder %v72_v24, 4 }
  0xaa   :  { %v77_v29 = vshrl.u32 %v597_v27, %v74_v23  ;;  %v80_v31 = vshrl.u32 %v598_v30, %v74_v23  ;;  %v83_v34 = vshrl.u32 %v599_v33, %v74_v23  ;;  %v86_v37 = vshrl.u32 %v600_v36, %v74_v23 }
  0xab   :  { %v89_v40 = vshrl.u32 %v601_v39, %v74_v23  ;;  %v75_v50 = vshrl.u32 %v596_v25, %v74_v23  ;;  %vm93_vm4 = vcmp.lt.s32.totalorder %v72_v24, 3  ;;  %vm92_vm5 = vcmp.lt.s32.totalorder %v72_v24, 2 }
  0xac   :  { %v78_v42 = vor.u32 %v77_v29, %v76_v26  ;;  %v81_v43 = vor.u32 %v80_v31, %v79_v28  ;;  %v84_v44 = vor.u32 %v83_v34, %v82_v32  ;;  %v87_v45 = vor.u32 %v86_v37, %v85_v35 }
  0xad   :  { %v90_v46 = vor.u32 %v89_v40, %v88_v38 }
  0xae   :  { %v96_v47 = vsel %vm94_vm3, %v84_v44, 2102212464  ;;  %v99_v48 = vsel %vm91_vm2, %v78_v42, %v81_v43  ;;  %v103_v49 = vsel %vm91_vm2, %v81_v43, %v84_v44  ;;  %v100_v51 = vsel %vm94_vm3, %v87_v45, 920167782 }
  0xaf   :  { %v104_v52 = vsel %vm94_vm3, %v90_v46, 1326507024  ;;  %v101_v53 = vsel %vm93_vm4, %v84_v44, %v100_v51  ;;  %v95_v56 = vsel %vm91_vm2, %v75_v50, %v78_v42  ;;  %v97_v57 = vsel %vm93_vm4, %v81_v43, %v96_v47 }
  0xb0   :  { %v105_v54 = vsel %vm93_vm4, %v87_v45, %v104_v52  ;;  %v102_v58 = vsel %vm92_vm5, %v99_v48, %v101_v53  ;;  %v98_v0 = vsel %vm92_vm5, %v95_v56, %v97_v57  ;;  %vm439_vm2 = vcmask 261120  }
  0xb1   :  { %v106_v59 = vsel %vm92_vm5, %v103_v49, %v105_v54  ;;  %v646_v62 = vmul.u32.u64.low %v107_v55, %v102_v58  ;;  %v647_v63 = vmul.u32.u64.high %v107_v55, %v102_v58, %v646_v62  ;;  %v114_v2 = vmul.u32 %v107_v55, %v98_v0 }
  0xb2   :  { %v643_v60 = vmul.u32.u64.low %v107_v55, %v106_v59  ;;  %v644_v61 = vmul.u32.u64.high %v107_v55, %v106_v59, %v643_v60  ;;  %v469_v59 = vld [vmem:[%s667_s3] ss:$0 sm:$0xff] }
  0xb3   :  { %v117_v1 = vadd.s32 1, %v647_v63 }
  0xb4   :  { %vm116_vm6 = vc.u32 %v644_v61, %v646_v62  ;;  %v115_v15 = vadd.s32 %v646_v62, %v644_v61 }
  0xb5   :  { %v118_v3 = vsel %vm116_vm6, %v117_v1, %v647_v63 }
  0xb6   :  { %v119_v4 = vadd.s32 %v118_v3, %v114_v2 }
  0xb8   :  { %v120_v5 = vadd.s32 536870912, %v119_v4 }
  0xba   :  { %v121_v6 = vshrl.u32 %v120_v5, 30 }
  0xbc   :  { %v122_v7 = vshll.u32 %v121_v6, 30  ;;  %v145_v29 = vsub.s32 4, %v121_v6 }
  0xbe   :  { %v123_v8 = vsub.s32 %v119_v4, %v122_v7  ;;  %v146_v32 = vsel %vm61_vm8, %v145_v29, %v121_v6 }
  0xbf   :  { %v148_v33 = vsel %vm60_vm9, 0, %v146_v32 }
  0xc0   :  { %v125_v9 = vsub.s32 0, %v123_v8  ;;  %v152_v34 = vadd.s32 3, %v148_v33  ;;  %v256_v35 = vand.u32 3, %v148_v33 }
  0xc2   :  { %v458_v10 = vmin.u32 %v125_v9, %v123_v8  ;;  %v153_v36 = vand.u32 3, %v152_v34  ;;  %vm261_vm10 = vcmp.eq.s32.totalorder %v256_v35, 2  ;;  %vm258_vm12 = vcmp.eq.s32.totalorder %v256_v35, 0 }
  0xc3   :  { %vm257_vm14 = vcmp.lt.s32.totalorder %v256_v35, 2 }
  0xc4   :  { %v127_v11 = vclz %v458_v10  ;;  %vm158_vm11 = vcmp.eq.s32.totalorder %v153_v36, 2  ;;  %vm155_vm13 = vcmp.eq.s32.totalorder %v153_v36, 0  ;;  %vm154_vm15 = vcmp.lt.s32.totalorder %v153_v36, 2 }
  0xc6   :  { %v459_v12 = vadd.s32 4294967294, %v127_v11 }
  0xc8   :  { %vm460_vm7 = vcmp.lt.s32.totalorder %v459_v12, 0 }
  0xc9   :  { %v130_v13 = vsel %vm460_vm7, 0, %v459_v12 }
  0xca   :  { %v131_v16 = vsub.s32 32, %v130_v13  ;;  %v135_v17 = vsub.s32 4294967266, %v130_v13  ;;  %v132_v18 = vshll.u32 %v123_v8, %v130_v13 }
  0xcc   :  { %v133_v20 = vshrl.u32 %v115_v15, %v131_v16  ;;  %v136_v21 = vadd.s32 127, %v135_v17 }
  0xce   :  { %v134_v22 = vor.u32 %v133_v20, %v132_v18  ;;  %v137_v23 = vshll.u32 %v136_v21, 23 }
  0xd0   :  { %v138_v24 = vor.u32 4788187, %v137_v23  ;;  %v141_v26 = vcvt.s32.f32 %v134_v22 }
  0xd2   :  { %v139_v25 = vand.u32 2147483647, %v138_v24 }
  0xd4   :  { %v142_v27 = vmul.f32 %v141_v26, %v139_v25 }
  0xd6   :  { %v143_v28 = vxor.u32 2147483648, %v142_v27 }
  0xd8   :  { %v144_v30 = vsel %vm61_vm8, %v143_v28, %v142_v27 }
  0xd9   :  { %v147_v31 = vsel %vm60_vm9, %v637_v14, %v144_v30 }
  0xda   :  { %511 = vcosq.f32 %v147_v31 }
  0xdb   :  { %513 = vsinq.f32 %v147_v31 }
  0xe7   :  { %v512_v37 = vpop.eup %511 }
  0xe8   :  { %v514_v38 = vpop.eup %513  ;;  %v159_v39 = vxor.u32 2147483648, %v512_v37 }
  0xe9   :  { %v156_v40 = vxor.u32 2147483648, %v514_v38 }
  0xea   :  { %v263_v41 = vsel %vm261_vm10, %v159_v39, %v514_v38  ;;  %v160_v19 = vsel %vm158_vm11, %v159_v39, %v514_v38 }
  0xeb   :  { %v260_v42 = vsel %vm258_vm12, %v512_v37, %v156_v40  ;;  %v157_v43 = vsel %vm155_vm13, %v512_v37, %v156_v40 }
  0xec   :  { %v264_v44 = vsel %vm257_vm14, %v260_v42, %v263_v41  ;;  %v161_v45 = vsel %vm154_vm15, %v157_v43, %v160_v19 }
  0xed   :  { %v265_v46 = vsel %vm151_vm0, nan, %v264_v44  ;;  %v162_v47 = vsel %vm151_vm0, nan, %v161_v45 }
  0xee   :  { %v466_v48 = vmul.f32 -1.442695, %v265_v46  ;;  %v465_v49 = vmul.f32 -1.442695, %v162_v47 }
  0xf0   :  { %515 = vpow2.f32 %v466_v48 }
  0xf1   :  { %517 = vpow2.f32 %v465_v49 }
  0xfd   :  { %v516_v50 = vpop.eup %515 }
  0xfe   :  { %v518_v51 = vpop.eup %517  ;;  %v276_v52 = vadd.f32 1.0, %v516_v50 }
  0xff   :  { %v269_v53 = vadd.f32 1.0, %v518_v51 }
 0x100   :  { %519 = vrcp.f32 %v276_v52 }
 0x101   :  { %521 = vrcp.f32 %v269_v53 }
 0x10d   :  { %v520_v54 = vpop.eup %519 }
 0x10e   :  { %v522_v55 = vpop.eup %521  ;;  %v279_v56 = vmul.f32 %v520_v54, %v265_v46 }
 0x10f   :  { %v272_v57 = vmul.f32 %v522_v55, %v162_v47 }
 0x110   :  { %481 = vmatmul.mubr.msk.f32.vlgmr.msra.gmra.mxu0 %vm284_vm1, %v279_v56 }
 0x111   :  { %488 = vmatmul.mubr.msk.f32.vlgmr.msra.gmra.mxu1 %vm284_vm1, %v272_v57 }
 0x1d0   :  { %v354_v14 = vpop.f32.mrf.mxu0 }
 0x1d1   :  { %v427_v58 = vpop.f32.mrf.mxu1 }
 0x1d2   :  { %v428_v60 = vadd.f32 %v427_v58, %v354_v14  ;;  %v482_v61 = vpop.f32.mrf.mxu0 }
 0x1d3   :  { %v489_v62 = vpop.f32.mrf.mxu1 }
 0x1d4   :  { %v438_v63 = vadd.f32 %v469_v59, %v428_v60 }
 0x1d6   :  { %440 = vst.msk [vmem:[#allocation7] sm:$0xff] %vm439_vm2, %v438_v63 }
 0x1d7   :  { %574 = shalt.err (!%p571_p0)
}
 0x1d8   :  { %450 = dma.vmem_to_hbm [thread:$0]  %s448_s29, 128, %s668_s4, [#allocation4]  }
 0x1d9   :  { %587 = dma.done.wait [#allocation4], 128  }
 0x1da   :  { %588 = vsyncadd [#allocation4], 4294967168 }
 0x1db   :  { %454 = vsyncpa [#allocation3], 1 }
 0x1dc   :  { %455 = vsyncpa [#allocation6], 1 }
 0x1dd   :  { %456 = vsyncpa [#allocation4], 1 }

</bundles_post_ra>
